<compile_context>
chip_gen: v7x
topology: tpu7x:2x2x1
jax: 0.10.0
libtpu: 0.0.40
codegen_flags: <defaults>
</compile_context>

<pallas_src>
import functools

import jax
import jax.numpy as jnp
from jax.experimental import pallas as pl
from jax.experimental.pallas import tpu as pltpu


def _round_up(x, m):
    return ((x + m - 1) // m) * m


def _mlp_fused_kernel(x_ref, *refs, num_layers):
    """Fused MLP over one M-tile.

    refs = (w0, b0, w1, b1, ..., w_{L-1}, b_{L-1}, o_ref)
    x_ref: [TM, Din]   w_i: [d_i, d_{i+1}]   b_i: [1, d_{i+1}]   o_ref: [TM, Dout]
    """
    o_ref = refs[-1]
    y = x_ref[...]
    for i in range(num_layers):
        w = refs[2 * i][...]
        b = refs[2 * i + 1][...]
        # Matmul in the weights' dtype (f32 or bf16) on the MXU, f32 accumulate.
        y = jnp.dot(y.astype(w.dtype), w, preferred_element_type=jnp.float32)
        y = y + b.astype(jnp.float32)          # bias add in f32 (VPU)
        if i < num_layers - 1:
            y = jnp.maximum(y, 0.0)            # ReLU on all but the last layer
    o_ref[...] = y.astype(o_ref.dtype)


def init_mlp_params(key, input_dim, hidden_dim, output_dim, num_layers,
                    dtype=jnp.float32):
    """Deterministic parameter init mirroring nn.Linear shapes.

    Returns list of (W[in, out], b[out]) per layer (W transposed vs nn.Linear).
    """
    h = [hidden_dim] * (num_layers - 1)
    dims_in = [input_dim] + h
    dims_out = h + [output_dim]
    params = []
    for n, k in zip(dims_in, dims_out):
        key, wk, bk = jax.random.split(key, 3)
        bound = 1.0 / jnp.sqrt(jnp.array(n, dtype))
        w = jax.random.uniform(wk, (n, k), dtype, -bound, bound)
        b = jax.random.uniform(bk, (k,), dtype, -bound, bound)
        params.append((w, b))
    return params


def _device_defaults():
    """Per-TPU-generation (M-tile cap, dimension_semantics)."""
    try:
        kind = jax.devices()[0].device_kind.lower()
    except Exception:  # pragma: no cover - non-TPU fallback
        kind = ""
    # v5e has a single vector-store slot: keep the (possibly spilled) f32
    # activation chain smaller there.  v6e/v7x: bigger tiles amortize the
    # ~0.35us per-grid-step overhead on this HBM-bound kernel.
    tile_cap = 512 if "v5" in kind else 1024
    if "v7" in kind:
        # v7x has 2 TensorCores per chip: shard the independent M axis across
        # them (plain "parallel" vs "arbitrary" is a measured no-op; only
        # CORE_PARALLEL changes codegen).
        dims = (getattr(pltpu, "CORE_PARALLEL", "parallel"),)
    else:
        dims = ("parallel",)
    return tile_cap, dims


def mlp_forward(params, x, *, tile_m=None, compute_dtype=None):
    """Forward pass: relu(linear(...)) for all but the last layer.

    Any leading dims are flattened into M (nn.Linear acts on the last axis).
    compute_dtype=jnp.bfloat16 streams x/W in bf16 (halves HBM read traffic);
    accumulation, bias add and ReLU stay in f32.
    """
    leading = x.shape[:-1]
    din = x.shape[-1]
    dout = params[-1][0].shape[1]
    num_layers = len(params)
    out_dtype = x.dtype

    default_cap, dim_semantics = _device_defaults()
    tile_cap = tile_m if tile_m is not None else default_cap

    x2d = x.reshape(-1, din)
    M = x2d.shape[0]

    # Tile M: as large as the cap allows, then shrunk to ~ceil(M / num_tiles)
    # (rounded to a multiple of 8 sublanes) so <8 rows are wasted overall.
    # grid = ceil(M / tm); the ragged last tile needs NO padded copy of x:
    # out-of-bounds reads only feed out-of-bounds rows and their stores are
    # dropped by Pallas, so x is read from HBM exactly once.
    num_tiles = max(1, -(-M // tile_cap))
    tm = _round_up(-(-M // num_tiles), 8)
    grid = (pl.cdiv(M, tm),)

    if compute_dtype is not None:
        x2d = x2d.astype(compute_dtype)

    # Specs: x/out tiled over M; each weight/bias is a single VMEM-resident
    # block (a few KB) reused by every grid step.
    in_specs = [pl.BlockSpec((tm, din), lambda i: (i, 0))]
    args = [x2d]
    for w, b in params:
        if compute_dtype is not None:
            w = w.astype(compute_dtype)
        n, k = w.shape
        in_specs.append(pl.BlockSpec((n, k), lambda i: (0, 0)))
        in_specs.append(pl.BlockSpec((1, k), lambda i: (0, 0)))
        args.append(w)
        args.append(b.astype(jnp.float32).reshape(1, k))  # bias stays f32
    # dout is NOT padded to 128 lanes on purpose (see header comment).
    out_spec = pl.BlockSpec((tm, dout), lambda i: (i, 0))

    in_itemsize = jnp.dtype(compute_dtype if compute_dtype is not None
                            else x.dtype).itemsize
    flops = 2 * M * sum(w.shape[0] * w.shape[1] for w, _ in params)
    bytes_accessed = (in_itemsize * (x2d.size + sum(w.size for w, _ in params))
                      + 4 * (M * dout + sum(b.size for _, b in params)))

    kernel = functools.partial(_mlp_fused_kernel, num_layers=num_layers)
    out = pl.pallas_call(
        kernel,
        out_shape=jax.ShapeDtypeStruct((M, dout), out_dtype),
        grid_spec=pl.GridSpec(grid=grid, in_specs=in_specs, out_specs=out_spec),
        compiler_params=pltpu.CompilerParams(
            dimension_semantics=dim_semantics,
        ),
        cost_estimate=pl.CostEstimate(
            flops=flops, transcendentals=0, bytes_accessed=bytes_accessed),
    )(*args)

    return out.reshape(*leading, dout)


def _reference(params, x):
    din = x.shape[-1]
    y = x.reshape(-1, din)
    for i, (w, b) in enumerate(params):
        y = y @ w + b
        if i < len(params) - 1:
            y = jnp.maximum(y, 0.0)
    return y.reshape(*x.shape[:-1], params[-1][0].shape[1])


if __name__ == "__main__":
    key = jax.random.PRNGKey(0)
    # Shapes consistent with hoiclip usage (e.g. bbox-embed MLP over queries):
    # x: [num_queries, batch, input_dim]
    input_dim, hidden_dim, output_dim, num_layers = 32, 32, 4, 3

    pkey, xkey, xkey2, xkey3 = jax.random.split(key, 4)
    params = init_mlp_params(pkey, input_dim, hidden_dim, output_dim, num_layers)

    # 1) Small canonical test (single tile, exact f32 path).
    x = jax.random.normal(xkey, (8, 2, input_dim), jnp.float32)
    out = jax.block_until_ready(mlp_forward(params, x))
    ref = _reference(params, x)
    assert out.shape == (8, 2, output_dim)
    assert jnp.allclose(out, ref, atol=1e-5, rtol=1e-5)

    # 2) Multi-tile + ragged last tile (M = 390, tile_m=128 -> 4 tiles of 104
    #    rows, last tile only partially valid; no padded copy of x is made).
    x2 = jax.random.normal(xkey2, (130, 3, input_dim), jnp.float32)
    out2 = jax.block_until_ready(mlp_forward(params, x2, tile_m=128))
    ref2 = _reference(params, x2)
    assert out2.shape == (130, 3, output_dim)
    assert jnp.allclose(out2, ref2, atol=1e-5, rtol=1e-5)

    # 3) bf16 streaming path (halves HBM read traffic; relaxed tolerance).
    x3 = jax.random.normal(xkey3, (64, 4, input_dim), jnp.float32)
    out3 = jax.block_until_ready(
        mlp_forward(params, x3, compute_dtype=jnp.bfloat16))
    ref3 = _reference(params, x3)
    assert out3.shape == (64, 4, output_dim)
    assert jnp.allclose(out3, ref3, atol=5e-2, rtol=5e-2)

    print("KERNEL_OK")
</pallas_src>

<mosaic_0001>
module attributes {stable_mosaic.version = 11 : i64} {
  func.func @_mlp_fused_kernel(%arg0: i32, %arg1: memref<16x32xf32, #tpu.memory_space<vmem>>, %arg2: memref<32x32xf32, #tpu.memory_space<vmem>>, %arg3: memref<1x32xf32, #tpu.memory_space<vmem>>, %arg4: memref<32x32xf32, #tpu.memory_space<vmem>>, %arg5: memref<1x32xf32, #tpu.memory_space<vmem>>, %arg6: memref<32x4xf32, #tpu.memory_space<vmem>>, %arg7: memref<1x4xf32, #tpu.memory_space<vmem>>, %arg8: memref<16x4xf32, #tpu.memory_space<vmem>>) attributes {dimension_semantics = [#tpu.dimension_semantics<parallel>], iteration_bounds = array<i64: 1>, scalar_prefetch = 0 : i64, scratch_operands = 0 : i64, tpu.core_type = #tpu.core_type<tc>, window_params = [{transform_indices = @transform_0, window_bounds = array<i64: 16, 32>}, {pipeline_mode = #tpu.pipeline_mode<synchronous>, transform_indices = @transform_1, window_bounds = array<i64: 32, 32>}, {pipeline_mode = #tpu.pipeline_mode<synchronous>, transform_indices = @transform_2, window_bounds = array<i64: 1, 32>}, {pipeline_mode = #tpu.pipeline_mode<synchronous>, transform_indices = @transform_3, window_bounds = array<i64: 32, 32>}, {pipeline_mode = #tpu.pipeline_mode<synchronous>, transform_indices = @transform_4, window_bounds = array<i64: 1, 32>}, {pipeline_mode = #tpu.pipeline_mode<synchronous>, transform_indices = @transform_5, window_bounds = array<i64: 32, 4>}, {pipeline_mode = #tpu.pipeline_mode<synchronous>, transform_indices = @transform_6, window_bounds = array<i64: 1, 4>}, {transform_indices = @transform_7, window_bounds = array<i64: 16, 4>}]} {
    %c0 = arith.constant 0 : index
    %c0_0 = arith.constant 0 : index
    %0 = vector.load %arg1[%c0, %c0_0] : memref<16x32xf32, #tpu.memory_space<vmem>>, vector<16x32xf32>
    %c0_1 = arith.constant 0 : index
    %c0_2 = arith.constant 0 : index
    %1 = vector.load %arg2[%c0_1, %c0_2] : memref<32x32xf32, #tpu.memory_space<vmem>>, vector<32x32xf32>
    %c0_3 = arith.constant 0 : index
    %c0_4 = arith.constant 0 : index
    %2 = vector.load %arg3[%c0_3, %c0_4] : memref<1x32xf32, #tpu.memory_space<vmem>>, vector<1x32xf32>
    %cst = arith.constant dense<0.000000e+00> : vector<16x32xf32>
    %3 = tpu.matmul %0, %1, %cst {dimension_numbers = #tpu.dot_dimension_numbers<[1], [0], [0], [1], [0, 0, 1, 1], [], []>} : vector<16x32xf32>, vector<32x32xf32>, vector<16x32xf32> -> vector<16x32xf32>
    %4 = vector.broadcast %2 : vector<1x32xf32> to vector<16x32xf32>
    %5 = arith.addf %3, %4 : vector<16x32xf32>
    %cst_5 = arith.constant 0.000000e+00 : f32
    %6 = vector.broadcast %cst_5 : f32 to vector<16x32xf32>
    %7 = arith.maximumf %5, %6 : vector<16x32xf32>
    %c0_6 = arith.constant 0 : index
    %c0_7 = arith.constant 0 : index
    %8 = vector.load %arg4[%c0_6, %c0_7] : memref<32x32xf32, #tpu.memory_space<vmem>>, vector<32x32xf32>
    %c0_8 = arith.constant 0 : index
    %c0_9 = arith.constant 0 : index
    %9 = vector.load %arg5[%c0_8, %c0_9] : memref<1x32xf32, #tpu.memory_space<vmem>>, vector<1x32xf32>
    %cst_10 = arith.constant dense<0.000000e+00> : vector<16x32xf32>
    %10 = tpu.matmul %7, %8, %cst_10 {dimension_numbers = #tpu.dot_dimension_numbers<[1], [0], [0], [1], [0, 0, 1, 1], [], []>} : vector<16x32xf32>, vector<32x32xf32>, vector<16x32xf32> -> vector<16x32xf32>
    %11 = vector.broadcast %9 : vector<1x32xf32> to vector<16x32xf32>
    %12 = arith.addf %10, %11 : vector<16x32xf32>
    %cst_11 = arith.constant 0.000000e+00 : f32
    %13 = vector.broadcast %cst_11 : f32 to vector<16x32xf32>
    %14 = arith.maximumf %12, %13 : vector<16x32xf32>
    %c0_12 = arith.constant 0 : index
    %c0_13 = arith.constant 0 : index
    %15 = vector.load %arg6[%c0_12, %c0_13] : memref<32x4xf32, #tpu.memory_space<vmem>>, vector<32x4xf32>
    %c0_14 = arith.constant 0 : index
    %c0_15 = arith.constant 0 : index
    %16 = vector.load %arg7[%c0_14, %c0_15] : memref<1x4xf32, #tpu.memory_space<vmem>>, vector<1x4xf32>
    %cst_16 = arith.constant dense<0.000000e+00> : vector<16x4xf32>
    %17 = tpu.matmul %14, %15, %cst_16 {dimension_numbers = #tpu.dot_dimension_numbers<[1], [0], [0], [1], [0, 0, 1, 1], [], []>} : vector<16x32xf32>, vector<32x4xf32>, vector<16x4xf32> -> vector<16x4xf32>
    %18 = vector.broadcast %16 : vector<1x4xf32> to vector<16x4xf32>
    %19 = arith.addf %17, %18 : vector<16x4xf32>
    %c0_17 = arith.constant 0 : index
    %c0_18 = arith.constant 0 : index
    %20 = vector.load %arg8[%c0_17, %c0_18] : memref<16x4xf32, #tpu.memory_space<vmem>>, vector<16x4xf32>
    tpu.vector_store %arg8[%c0_17, %c0_18], %19 {strides = array<i32>} : memref<16x4xf32, #tpu.memory_space<vmem>>, vector<16x4xf32>,
    return
  }
  func.func @transform_0(%arg0: i32) -> (i32, i32) {
    %c0_i32 = arith.constant 0 : i32
    %c0_i32_0 = arith.constant 0 : i32
    return %arg0, %c0_i32 : i32, i32
  }
  func.func @transform_1(%arg0: i32) -> (i32, i32) {
    %c0_i32 = arith.constant 0 : i32
    %c0_i32_0 = arith.constant 0 : i32
    %c0_i32_1 = arith.constant 0 : i32
    return %c0_i32, %c0_i32_0 : i32, i32
  }
  func.func @transform_2(%arg0: i32) -> (i32, i32) {
    %c0_i32 = arith.constant 0 : i32
    %c0_i32_0 = arith.constant 0 : i32
    %c0_i32_1 = arith.constant 0 : i32
    return %c0_i32, %c0_i32_0 : i32, i32
  }
  func.func @transform_3(%arg0: i32) -> (i32, i32) {
    %c0_i32 = arith.constant 0 : i32
    %c0_i32_0 = arith.constant 0 : i32
    %c0_i32_1 = arith.constant 0 : i32
    return %c0_i32, %c0_i32_0 : i32, i32
  }
  func.func @transform_4(%arg0: i32) -> (i32, i32) {
    %c0_i32 = arith.constant 0 : i32
    %c0_i32_0 = arith.constant 0 : i32
    %c0_i32_1 = arith.constant 0 : i32
    return %c0_i32, %c0_i32_0 : i32, i32
  }
  func.func @transform_5(%arg0: i32) -> (i32, i32) {
    %c0_i32 = arith.constant 0 : i32
    %c0_i32_0 = arith.constant 0 : i32
    %c0_i32_1 = arith.constant 0 : i32
    return %c0_i32, %c0_i32_0 : i32, i32
  }
  func.func @transform_6(%arg0: i32) -> (i32, i32) {
    %c0_i32 = arith.constant 0 : i32
    %c0_i32_0 = arith.constant 0 : i32
    %c0_i32_1 = arith.constant 0 : i32
    return %c0_i32, %c0_i32_0 : i32, i32
  }
  func.func @transform_7(%arg0: i32) -> (i32, i32) {
    %c0_i32 = arith.constant 0 : i32
    %c0_i32_0 = arith.constant 0 : i32
    return %arg0, %c0_i32 : i32, i32
  }
}

</mosaic_0001>

<bundles_post_ra>
// kernel: tpu_custom_call.1
= control target key start
LH: loop header
LB: loop body
LE: loop exit
PB: predicated region body
PF: predicated region fallthrough
CT: control target
= control target key end

     0   :  { %12 = vsyncpa [#allocation3], 0  ;;  %s595_s0 = inlined_call_operand.hbm [shape: f32[16,32], index: 0, kind: input, shape index: {}]   ;;  %s596_s1 = inlined_call_operand.vmem [shape: f32[32,32], index: 1, kind: input, shape index: {}]   ;;  %s597_s2 = inlined_call_operand.vmem [shape: f32[1,32], index: 2, kind: input, shape index: {}]   ;;  %s598_s3 = inlined_call_operand.hbm [shape: f32[32,32], index: 3, kind: input, shape index: {}]   ;;  %s599_s4 = inlined_call_operand.vmem [shape: f32[1,32], index: 4, kind: input, shape index: {}]   ;;  %s600_s5 = inlined_call_operand.vmem [shape: f32[32,4], index: 5, kind: input, shape index: {}]   ;;  %s601_s6 = inlined_call_operand.vmem [shape: f32[1,4], index: 6, kind: input, shape index: {}]   ;;  %s602_s7 = inlined_call_operand.vmem [shape: f32[16,4], index: 7, kind: output, shape index: {}]  }
   0x1   :  { %13 = vsyncpa [#allocation5], 0  ;;  %s482_s24 = smov [#allocation2]   ;;  %s434_s28 = scalar_lea.hbm %s595_s0, 256 }
   0x2   :  { %s19_s25 = sshll.u32 %s482_s24, 4  ;;  %p435_p0 = scmp.ne.s32.totalorder %s595_s0, %s434_s28  ;;  %s20_s25 = int_to_ptr.vmem [resolvable:$true] %s19_s25 }
   0x3   :  { %p438_p1 = scmp.lt.u32.totalorder %s434_s28, %s595_s0 }
   0x5   :  { %p440_p2 = pnand %p438_p1, %p435_p0 }
   0x7   :  { %443 = shalt.err (!%p440_p2)
}
   0x8   :  { %s444_s10 = scalar_lea.vmem %s20_s25, 256  ;;  %p449_p4 = scmp.lt.s32.totalorder %s20_s25, %s20_s25 }
   0x9   :  { %p445_p3 = scmp.ne.s32.totalorder %s20_s25, %s444_s10  ;;  %p450_p5 = scmp.lt.s32.totalorder %s444_s10, %s444_s10 }
   0xb   :  { %p451_p6 = por %p450_p5, %p449_p4 }
   0xd   :  { %p452_p7 = pnand %p451_p6, %p445_p3 }
   0xf   :  { %455 = shalt.err (!%p452_p7)
}
  0x10   :  { %s483_s11 = smov 128   ;;  %s484_s12 = smov 8  }
  0x11   :  { %25 = dma.hbm_to_vmem [thread:$0]  %s595_s0, 256, %s20_s25, [#allocation3], %s483_s11, %s483_s11, %s484_s12  }
  0x12   :  { %s485_s15 = smov [#allocation4]   ;;  %s456_s19 = scalar_lea.hbm %s598_s3, 512 }
  0x13   :  { %s35_s16 = sshll.u32 %s485_s15, 4  ;;  %p457_p8 = scmp.ne.s32.totalorder %s598_s3, %s456_s19  ;;  %s36_s16 = int_to_ptr.vmem [resolvable:$true] %s35_s16 }
  0x14   :  { %p460_p9 = scmp.lt.u32.totalorder %s456_s19, %s598_s3 }
  0x16   :  { %p462_p10 = pnand %p460_p9, %p457_p8 }
  0x18   :  { %465 = shalt.err (!%p462_p10)
}
  0x19   :  { %s466_s24 = scalar_lea.vmem %s36_s16, 512  ;;  %p471_p12 = scmp.lt.s32.totalorder %s36_s16, %s36_s16 }
  0x1a   :  { %p467_p11 = scmp.ne.s32.totalorder %s36_s16, %s466_s24  ;;  %p472_p13 = scmp.lt.s32.totalorder %s466_s24, %s466_s24 }
  0x1c   :  { %p473_p0 = por %p472_p13, %p471_p12 }
  0x1e   :  { %p474_p1 = pnand %p473_p0, %p467_p11 }
  0x20   :  { %477 = shalt.err (!%p474_p1)
}
  0x21   :  { %41 = dma.hbm_to_vmem [thread:$0]  %s598_s3, 512, %s36_s16, [#allocation5], %s483_s11, %s483_s11, %s484_s12  }
  0x22   :  { %478 = dma.done.wait [#allocation3], 256  }
  0x23   :  { %479 = vsyncadd [#allocation3], 4294967040 }
  0x24   :  { %480 = dma.done.wait [#allocation5], 512  }
  0x25   :  { %481 = vsyncadd [#allocation5], 4294966784  ;;  %vm67_vm0 = vcmask 261120   ;;  %v56_v0 = vld [vmem:[%s596_s1] sm:$0xff]  ;;  %v57_v1 = vld [vmem:[%s596_s1 + $0x8] sm:$0xff]  ;;  %vm337_vm1 = vcmask 31744  }
  0x26   :  { %v58_v2 = vld [vmem:[%s596_s1 + $0x10] sm:$0xff]  ;;  %v406_v3 = vpack.c.bf16 %v57_v1, %v56_v0  ;;  %v59_v4 = vld [vmem:[%s596_s1 + $0x18] sm:$0xff]  ;;  %v54_v5 = vld [vmem:[#allocation2] sm:$0xff] }
  0x27   :  { %v410_v6 = vpack.c.bf16 %v59_v4, %v58_v2  ;;  %381 = vmatprep.mubr.msk.f32.mxu0 %vm67_vm0, %v54_v5  ;;  %v151_v7 = vld [vmem:[#allocation4] sm:$0xff]  ;;  %v152_v8 = vld [vmem:[#allocation4 + $0x8] sm:$0xff]  ;;  %v55_v10 = vld [vmem:[#allocation2 + $0x8] sm:$0xff] }
  0x28   :  { %407 = vmatprep.subr.bf16.mxu0 %v406_v3  ;;  %v414_v9 = vpack.c.bf16 %v152_v8, %v151_v7  ;;  %v153_v11 = vld [vmem:[#allocation4 + $0x10] sm:$0xff]  ;;  %v154_v12 = vld [vmem:[#allocation4 + $0x18] sm:$0xff]  ;;  %v247_v24 = vld [vmem:[%s600_s5 + $0x10] sm:$0xff] }
  0x29   :  { %409 = vmatpush3.bf16.msra.mxu0 %v406_v3  ;;  %v418_v13 = vpack.c.bf16 %v154_v12, %v153_v11  ;;  %v245_v14 = vld [vmem:[%s600_s5] sm:$0xff]  ;;  %v246_v15 = vld [vmem:[%s600_s5 + $0x8] sm:$0xff]  ;;  %v248_v25 = vld [vmem:[%s600_s5 + $0x18] sm:$0xff] }
  0x2a   :  { %411 = vmatprep.subr.bf16.mxu0 %v410_v6  ;;  %415 = vmatprep.subr.bf16.mxu1 %v414_v9  ;;  %v422_v16 = vpack.c.bf16 %v246_v15, %v245_v14  ;;  %v346_v17 = vld [vmem:[%s597_s2] ss:$0 sm:$0xff]  ;;  %v426_v26 = vpack.c.bf16 %v248_v25, %v247_v24 }
  0x2b   :  { %417 = vmatpush3.bf16.msra.mxu1 %v414_v9  ;;  %v349_v27 = vld [vmem:[%s599_s4] ss:$0 sm:$0xff] }
  0x2c   :  { %419 = vmatprep.subr.bf16.mxu1 %v418_v13  ;;  %v352_v34 = vld [vmem:[%s601_s6] ss:$0 sm:$0xff] }
  0x2d   :  { %413 = vmatpush3.bf16.msra.mxu0 %v410_v6 }
  0x2e   :  { %423 = vmatprep.subr.bf16.mxu0 %v422_v16 }
  0x2f   :  { %421 = vmatpush3.bf16.msra.mxu1 %v418_v13 }
  0x30   :  { %382 = vmatmul.mubr.msk.f32.vlgmr.msra.gmra.mrb[0].mxu0 %vm67_vm0, %v55_v10 }
  0x31   :  { %425 = vmatpush3.bf16.msra.mxu0 %v422_v16 }
  0x32   :  { %427 = vmatprep.subr.bf16.mxu0 %v426_v26 }
  0x35   :  { %429 = vmatpush3.bf16.msra.mxu0 %v426_v26 }
 0x103   :  { %v383_v18 = vpop.f32.mrb[0].mxu0 }
 0x104   :  { %v146_v19 = vadd.f32 %v383_v18, %v346_v17  ;;  %v140_v20 = vpop.f32.mrb[1].mxu0 }
 0x105   :  { %v141_v21 = vadd.f32 %v346_v17, %v140_v20 }
 0x106   :  { %v150_v23 = vmax.f32 %v146_v19, 0.0 }
 0x107   :  { %v149_v22 = vmax.f32 %v141_v21, 0.0 }
 0x109   :  { %392 = vmatprep.mubr.msk.f32.mxu1 %vm67_vm0, %v149_v22 }
 0x10a   :  { %393 = vmatmul.mubr.msk.f32.vlgmr.msra.gmra.mrb[0].mxu1 %vm67_vm0, %v150_v23 }
 0x1dd   :  { %v394_v28 = vpop.f32.mrb[0].mxu1 }
 0x1de   :  { %v240_v29 = vadd.f32 %v394_v28, %v349_v27  ;;  %v234_v30 = vpop.f32.mrb[1].mxu1 }
 0x1df   :  { %v235_v31 = vadd.f32 %v349_v27, %v234_v30 }
 0x1e0   :  { %v244_v33 = vmax.f32 %v240_v29, 0.0 }
 0x1e1   :  { %v243_v32 = vmax.f32 %v235_v31, 0.0 }
 0x1e3   :  { %403 = vmatprep.mubr.msk.f32.mxu0 %vm67_vm0, %v243_v32 }
 0x1e4   :  { %404 = vmatmul.mubr.msk.f32.vlgmr.msra.gmra.mrb[2].mxu0 %vm67_vm0, %v244_v33 }
 0x2b7   :  { %v405_v35 = vpop.f32.mrb[2].mxu0 }
 0x2b8   :  { %v334_v36 = vadd.f32 %v405_v35, %v352_v34  ;;  %v328_v37 = vpop.f32.mrb[3].mxu0 }
 0x2b9   :  { %v329_v38 = vadd.f32 %v352_v34, %v328_v37 }
 0x2ba   :  { %339 = vst.msk [vmem:[%s602_s7 + $0x8] sm:$0xff] %vm337_vm1, %v334_v36 }
 0x2bb   :  { %338 = vst.msk [vmem:[%s602_s7] sm:$0xff] %vm337_vm1, %v329_v38 }
 0x2bc   :  { %344 = vsyncpa [#allocation3], 1 }
 0x2bd   :  { %345 = vsyncpa [#allocation5], 1 }

</bundles_post_ra>
